<compile_context>
chip_gen: v5e
topology: v5e:2x2
jax: 0.10.0
libtpu: 0.0.40
codegen_flags: <defaults>
</compile_context>

<pallas_src>
import functools
import math

import numpy as np
import jax
import jax.numpy as jnp
from jax.experimental import pallas as pl
from jax.experimental.pallas import tpu as pltpu


# ----------------------------------------------------------------------------
# Tuning knobs (mem-bound streaming: big lane-dense blocks ~= HBM roofline)
# ----------------------------------------------------------------------------
_FUSED_BLOCK_BUDGET = 2 * 1024 * 1024      # bytes per (1, tr, lane) block
_VEC_BUDGET = 256 * 1024                   # bytes per (1, lane) scale/bias vec
_FALLBACK_BLOCK_BUDGET = 2 * 1024 * 1024   # bytes per (tr, lane) fallback block
_VMEM_LIMIT_BYTES = 32 * 1024 * 1024       # raises v5e's 16 MiB default scoped VMEM


def _sublane_multiple(dtype):
    item = np.dtype(dtype).itemsize
    if item >= 4:
        return 8
    if item == 2:
        return 16
    return 32


def _divisors(n):
    ds = set()
    i = 1
    while i * i <= n:
        if n % i == 0:
            ds.add(i)
            ds.add(n // i)
        i += 1
    return sorted(ds)


def _largest_divisor_multiple(n, mult, cap):
    """Largest t with t | n, t % mult == 0, t <= cap (None if none)."""
    best = None
    for t in _divisors(n):
        if t % mult == 0 and t <= cap and (best is None or t > best):
            best = t
    return best


# ----------------------------------------------------------------------------
# Pallas kernels
# ----------------------------------------------------------------------------
def _fused_cat_kernel(kx, x_ref, y_ref, sx_ref, bx_ref, sy_ref, by_ref, o_ref):
    """Writes one (1, TR, LANE) block of the channel-concatenated output.

    Grid is (N, kx + ky).  Chunk i < kx comes from x (scale sx / shift bx),
    otherwise from y (sy / by).  sx/bx/sy/by are per-lane repetitions of
    weight[c], b[c] with c = flat_index % C, reproducing torch's
    `weight * x.view(N, H, W, C) + b`.
    """
    i = pl.program_id(1)

    @pl.when(i < kx)
    def _():
        o_ref[...] = (x_ref[...] * sx_ref[...] + bx_ref[...]).astype(o_ref.dtype)

    @pl.when(i >= kx)
    def _():
        o_ref[...] = (y_ref[...] * sy_ref[...] + by_ref[...]).astype(o_ref.dtype)


def _affine_kernel(x_ref, s_ref, b_ref, o_ref):
    """Fallback: per-row affine over lane-aligned flat rows."""
    o_ref[...] = (x_ref[...] * s_ref[...] + b_ref[...]).astype(o_ref.dtype)


# ----------------------------------------------------------------------------
# Fused path
# ----------------------------------------------------------------------------
def _pick_fused_tiling(lx, ly, c1, c2, itemsize, sub):
    """Pick (lane, tr) for the fused path, growing BOTH toward the budget.

    lane must be a common divisor of lx, ly that is a multiple of lcm(C1,C2)
    (phase-aligned per-lane scale pattern) and, preferably, of 128 (lane-dense
    stores).  tr must be a multiple of `sub` dividing gcd(lx,ly)//lane (so it
    divides both row counts).  Maximize tr*lane subject to the block budget.
    """
    g = math.gcd(lx, ly)
    base = (c1 * c2) // math.gcd(c1, c2)                # lcm(C1, C2)
    lane_unit = (base * 128) // math.gcd(base, 128)     # lcm(base, 128)
    if g % lane_unit != 0:
        lane_unit = base
        if g % lane_unit != 0:
            return None

    r_max = g // lane_unit
    best = None                                          # ((elems, lane), lane, tr)
    for d in _divisors(r_max):
        lane = lane_unit * d
        if lane * itemsize > _VEC_BUDGET:                # (1, lane) scale/bias vecs
            continue
        rr = r_max // d                                  # == gcd(lx, ly) // lane
        cap = max(sub, _FUSED_BLOCK_BUDGET // (lane * itemsize))
        tr = _largest_divisor_multiple(rr, sub, cap)
        if tr is None:
            continue
        key = (tr * lane, lane)
        if best is None or key > best[0]:
            best = (key, lane, tr)
    if best is None:
        return None
    return best[1], best[2]


def _fused_weight_cat(x, y, wx, bx, wy, by, out_dtype):
    """Both affines + channel concat in one pallas_call (returns None if the
    shapes admit no common lane-dense tiling)."""
    N, C1, H, W = x.shape
    _, C2, _, _ = y.shape
    lx, ly = C1 * H * W, C2 * H * W

    itemsize = max(np.dtype(t).itemsize for t in (x.dtype, y.dtype, out_dtype))
    sub = max(_sublane_multiple(t) for t in (x.dtype, y.dtype, out_dtype))
    pick = _pick_fused_tiling(lx, ly, C1, C2, itemsize, sub)
    if pick is None:
        return None
    lane, tr = pick

    rx, ry = lx // lane, ly // lane
    kx, ky = rx // tr, ry // tr

    # Free reshapes of the contiguous NCHW buffers (no HBM copies).
    x3 = x.reshape(N, rx, lane)
    y3 = y.reshape(N, ry, lane)

    # Fold the per-channel affine into per-lane vectors once, in the wrapper.
    sx = jnp.tile(wx, lane // C1).reshape(1, lane)
    bxv = jnp.tile(bx, lane // C1).reshape(1, lane)
    sy = jnp.tile(wy, lane // C2).reshape(1, lane)
    byv = jnp.tile(by, lane // C2).reshape(1, lane)

    vec_spec = pl.BlockSpec((1, lane), lambda n, i: (0, 0))
    out = pl.pallas_call(
        functools.partial(_fused_cat_kernel, kx),
        out_shape=jax.ShapeDtypeStruct((N, rx + ry, lane), out_dtype),
        grid=(N, kx + ky),
        in_specs=[
            # Clamped index maps: the inactive stream keeps the same block
            # index, so Pallas skips its re-fetch -> no duplicate HBM reads.
            pl.BlockSpec((1, tr, lane),
                         lambda n, i: (n, jnp.minimum(i, kx - 1), 0)),
            pl.BlockSpec((1, tr, lane),
                         lambda n, i: (n, jnp.maximum(i - kx, 0), 0)),
            vec_spec, vec_spec, vec_spec, vec_spec,
        ],
        out_specs=pl.BlockSpec((1, tr, lane), lambda n, i: (n, i, 0)),
        compiler_params=pltpu.CompilerParams(
            # Every grid step writes a distinct output block -> both axes are
            # independent; "parallel" on the chunk axis lets v7x's two TCs
            # share the work even when N is tiny.
            dimension_semantics=("parallel", "parallel"),
            vmem_limit_bytes=_VMEM_LIMIT_BYTES),
    )(x3, y3, sx, bxv, sy, byv)
    # Output flat layout already matches NCHW channel-concat -> free reshape.
    return out.reshape(N, C1 + C2, H, W)


# ----------------------------------------------------------------------------
# Fallback path (odd shapes / concat dims other than 1)
# ----------------------------------------------------------------------------
def _channel_affine(x, scale_c, shift_c, out_dtype):
    """Per-tensor affine over lane-aligned flat rows; caller concatenates."""
    N, C, H, W = x.shape
    total = N * C * H * W
    itemsize = max(np.dtype(x.dtype).itemsize, np.dtype(out_dtype).itemsize)
    sub = max(_sublane_multiple(x.dtype), _sublane_multiple(out_dtype))

    # Widest phase-aligned lane: lcm(C,128) when it divides the flat length
    # (lane-dense unmasked stores), otherwise C.
    lane = (C * 128) // math.gcd(C, 128)
    if total % lane != 0:
        lane = C
    rows = total // lane

    scale = jnp.tile(scale_c, lane // C).reshape(1, lane)
    shift = jnp.tile(shift_c, lane // C).reshape(1, lane)
    xm = x.reshape(rows, lane)   # rows of `lane` consecutive flat elements

    cap = max(sub, _FALLBACK_BLOCK_BUDGET // (lane * itemsize))
    tr = _largest_divisor_multiple(rows, sub, cap)
    if tr is not None:
        grid = (rows // tr,)
    elif rows <= cap:
        tr, grid = rows, (1,)                      # small array: one full block
    else:
        # No exact divisor: round the tile to the sublane multiple and let
        # Pallas mask the partial tail block.
        tr = max(sub, (cap // sub) * sub)
        grid = (pl.cdiv(rows, tr),)

    out = pl.pallas_call(
        _affine_kernel,
        out_shape=jax.ShapeDtypeStruct((rows, lane), out_dtype),
        grid=grid,
        in_specs=[pl.BlockSpec((tr, lane), lambda i: (i, 0)),
                  pl.BlockSpec((1, lane), lambda i: (0, 0)),
                  pl.BlockSpec((1, lane), lambda i: (0, 0))],
        out_specs=pl.BlockSpec((tr, lane), lambda i: (i, 0)),
        compiler_params=pltpu.CompilerParams(
            dimension_semantics=("parallel",),
            vmem_limit_bytes=_VMEM_LIMIT_BYTES),
    )(xm, scale, shift)
    return out.reshape(N, C, H, W)


# ----------------------------------------------------------------------------
# Public forward
# ----------------------------------------------------------------------------
def weight_cat_forward(x, y, w, b, *, epsilon=1e-4, dim=1):
    """Pallas implementation of weight_cat.forward(x, y)."""
    N1, C1, H1, W1 = x.shape
    N2, C2, H2, W2 = y.shape
    ww = w[:C1 + C2]
    weight = ww / (jnp.sum(ww) + epsilon)            # normalized once in wrapper
    wx, wy = weight[:C1], weight[C1:C1 + C2]
    bx, by = b[:C1], b[C1:C1 + C2]
    # Match torch/JAX promotion: fp32 params x bf16 activations -> fp32 output.
    out_dtype = jnp.result_type(x.dtype, y.dtype, weight.dtype, b.dtype)

    if dim == 1 and N1 == N2 and H1 == H2 and W1 == W2:
        fused = _fused_weight_cat(x, y, wx, bx, wy, by, out_dtype)
        if fused is not None:
            return fused

    # Fallback: separate affine kernels + XLA concat.
    x1 = _channel_affine(x, wx, bx, out_dtype)
    x2 = _channel_affine(y, wy, by, out_dtype)
    return jnp.concatenate([x1, x2], axis=dim)


# ----------------------------------------------------------------------------
# Pure-JAX reference (mirrors the torch forward; .view == reshape)
# ----------------------------------------------------------------------------
def _reference(x, y, w, b, epsilon=1e-4):
    N1, C1, H1, W1 = x.shape
    N2, C2, H2, W2 = y.shape
    ww = w[:C1 + C2]
    weight = ww / (jnp.sum(ww) + epsilon)
    x1 = (weight[:C1] * x.reshape(N1, H1, W1, C1) + b[:C1]).reshape(N1, C1, H1, W1)
    x2 = (weight[C1:C1 + C2] * y.reshape(N2, H2, W2, C2)
          + b[C1:C1 + C2]).reshape(N2, C2, H2, W2)
    return jnp.concatenate([x1, x2], axis=1)


if __name__ == "__main__":
    key = jax.random.PRNGKey(0)
    k1, k2, kw, kb = jax.random.split(key, 4)

    # weight_cat(dim=1, inchannel1=4, inchannel2=8) on small NCHW feature maps.
    N, C1, C2, H, W = 2, 4, 8, 16, 16
    x = jax.random.normal(k1, (N, C1, H, W), jnp.float32)
    y = jax.random.normal(k2, (N, C2, H, W), jnp.float32)
    # Module params (init is ones/zeros); perturb so the affine is non-trivial.
    w = jnp.ones((C1 + C2,), jnp.float32) + 0.1 * jax.random.normal(
        kw, (C1 + C2,), jnp.float32)
    b = 0.05 * jax.random.normal(kb, (C1 + C2,), jnp.float32)

    fwd = jax.jit(weight_cat_forward)
    out = jax.block_until_ready(fwd(x, y, w, b))

    ref = _reference(x, y, w, b)
    assert out.shape == (N, C1 + C2, H, W), out.shape
    assert out.dtype == ref.dtype, (out.dtype, ref.dtype)
    assert jnp.isfinite(out).all()
    assert jnp.allclose(out, ref, atol=1e-5, rtol=1e-5), float(
        jnp.max(jnp.abs(out - ref)))

    # Also exercise the fallback path (shapes with no common lane-dense tiling).
    Hb = Wb = 3
    xb = jax.random.normal(k1, (N, C1, Hb, Wb), jnp.float32)
    yb = jax.random.normal(k2, (N, C2, Hb, Wb), jnp.float32)
    outb = jax.block_until_ready(jax.jit(weight_cat_forward)(xb, yb, w, b))
    refb = _reference(xb, yb, w, b)
    assert jnp.allclose(outb, refb, atol=1e-5, rtol=1e-5)

    print("KERNEL_OK")
</pallas_src>

<mosaic_0001>
module attributes {stable_mosaic.version = 11 : i64} {
  func.func @_fused_cat_kernel(%arg0: i32, %arg1: i32, %arg2: memref<1x8x128xf32, #tpu.memory_space<vmem>>, %arg3: memref<1x8x128xf32, #tpu.memory_space<vmem>>, %arg4: memref<1x128xf32, #tpu.memory_space<vmem>>, %arg5: memref<1x128xf32, #tpu.memory_space<vmem>>, %arg6: memref<1x128xf32, #tpu.memory_space<vmem>>, %arg7: memref<1x128xf32, #tpu.memory_space<vmem>>, %arg8: memref<1x8x128xf32, #tpu.memory_space<vmem>>) attributes {dimension_semantics = [#tpu.dimension_semantics<parallel>, #tpu.dimension_semantics<parallel>], iteration_bounds = array<i64: 2, 3>, scalar_prefetch = 0 : i64, scratch_operands = 0 : i64, tpu.core_type = #tpu.core_type<tc>, window_params = [{transform_indices = @transform_0, window_bounds = array<i64: 1, 8, 128>}, {transform_indices = @transform_1, window_bounds = array<i64: 1, 8, 128>}, {pipeline_mode = #tpu.pipeline_mode<synchronous>, transform_indices = @transform_2, window_bounds = array<i64: 1, 128>}, {pipeline_mode = #tpu.pipeline_mode<synchronous>, transform_indices = @transform_3, window_bounds = array<i64: 1, 128>}, {pipeline_mode = #tpu.pipeline_mode<synchronous>, transform_indices = @transform_4, window_bounds = array<i64: 1, 128>}, {pipeline_mode = #tpu.pipeline_mode<synchronous>, transform_indices = @transform_5, window_bounds = array<i64: 1, 128>}, {transform_indices = @transform_6, window_bounds = array<i64: 1, 8, 128>}]} {
    %c1_i32 = arith.constant 1 : i32
    %0 = arith.cmpi slt, %arg1, %c1_i32 : i32
    %1 = arith.extui %0 : i1 to i32
    %c0_i32 = arith.constant 0 : i32
    %2 = arith.cmpi ne, %1, %c0_i32 : i32
    scf.if %2 {
      %c0 = arith.constant 0 : index
      %c0_2 = arith.constant 0 : index
      %c0_3 = arith.constant 0 : index
      %6 = vector.load %arg2[%c0, %c0_2, %c0_3] : memref<1x8x128xf32, #tpu.memory_space<vmem>>, vector<1x8x128xf32>
      %c0_4 = arith.constant 0 : index
      %c0_5 = arith.constant 0 : index
      %7 = vector.load %arg4[%c0_4, %c0_5] : memref<1x128xf32, #tpu.memory_space<vmem>>, vector<1x128xf32>
      %8 = vector.shape_cast %7 : vector<1x128xf32> to vector<1x1x128xf32>
      %9 = vector.broadcast %8 : vector<1x1x128xf32> to vector<1x8x128xf32>
      %10 = arith.mulf %6, %9 : vector<1x8x128xf32>
      %c0_6 = arith.constant 0 : index
      %c0_7 = arith.constant 0 : index
      %11 = vector.load %arg5[%c0_6, %c0_7] : memref<1x128xf32, #tpu.memory_space<vmem>>, vector<1x128xf32>
      %12 = vector.shape_cast %11 : vector<1x128xf32> to vector<1x1x128xf32>
      %13 = vector.broadcast %12 : vector<1x1x128xf32> to vector<1x8x128xf32>
      %14 = arith.addf %10, %13 : vector<1x8x128xf32>
      %c0_8 = arith.constant 0 : index
      %c0_9 = arith.constant 0 : index
      %c0_10 = arith.constant 0 : index
      %15 = vector.load %arg8[%c0_8, %c0_9, %c0_10] : memref<1x8x128xf32, #tpu.memory_space<vmem>>, vector<1x8x128xf32>
      tpu.vector_store %arg8[%c0_8, %c0_9, %c0_10], %14 {strides = array<i32>} : memref<1x8x128xf32, #tpu.memory_space<vmem>>, vector<1x8x128xf32>,
    } else {
    }
    %c1_i32_0 = arith.constant 1 : i32
    %3 = arith.cmpi sge, %arg1, %c1_i32_0 : i32
    %4 = arith.extui %3 : i1 to i32
    %c0_i32_1 = arith.constant 0 : i32
    %5 = arith.cmpi ne, %4, %c0_i32_1 : i32
    scf.if %5 {
      %c0 = arith.constant 0 : index
      %c0_2 = arith.constant 0 : index
      %c0_3 = arith.constant 0 : index
      %6 = vector.load %arg3[%c0, %c0_2, %c0_3] : memref<1x8x128xf32, #tpu.memory_space<vmem>>, vector<1x8x128xf32>
      %c0_4 = arith.constant 0 : index
      %c0_5 = arith.constant 0 : index
      %7 = vector.load %arg6[%c0_4, %c0_5] : memref<1x128xf32, #tpu.memory_space<vmem>>, vector<1x128xf32>
      %8 = vector.shape_cast %7 : vector<1x128xf32> to vector<1x1x128xf32>
      %9 = vector.broadcast %8 : vector<1x1x128xf32> to vector<1x8x128xf32>
      %10 = arith.mulf %6, %9 : vector<1x8x128xf32>
      %c0_6 = arith.constant 0 : index
      %c0_7 = arith.constant 0 : index
      %11 = vector.load %arg7[%c0_6, %c0_7] : memref<1x128xf32, #tpu.memory_space<vmem>>, vector<1x128xf32>
      %12 = vector.shape_cast %11 : vector<1x128xf32> to vector<1x1x128xf32>
      %13 = vector.broadcast %12 : vector<1x1x128xf32> to vector<1x8x128xf32>
      %14 = arith.addf %10, %13 : vector<1x8x128xf32>
      %c0_8 = arith.constant 0 : index
      %c0_9 = arith.constant 0 : index
      %c0_10 = arith.constant 0 : index
      %15 = vector.load %arg8[%c0_8, %c0_9, %c0_10] : memref<1x8x128xf32, #tpu.memory_space<vmem>>, vector<1x8x128xf32>
      tpu.vector_store %arg8[%c0_8, %c0_9, %c0_10], %14 {strides = array<i32>} : memref<1x8x128xf32, #tpu.memory_space<vmem>>, vector<1x8x128xf32>,
    } else {
    }
    return
  }
  func.func @transform_0(%arg0: i32, %arg1: i32) -> (i32, i32, i32) {
    %c0_i32 = arith.constant 0 : i32
    %0 = arith.minsi %arg1, %c0_i32 : i32
    %c0_i32_0 = arith.constant 0 : i32
    %c0_i32_1 = arith.constant 0 : i32
    return %arg0, %0, %c0_i32_0 : i32, i32, i32
  }
  func.func @transform_1(%arg0: i32, %arg1: i32) -> (i32, i32, i32) {
    %c1_i32 = arith.constant 1 : i32
    %0 = arith.subi %arg1, %c1_i32 : i32
    %c0_i32 = arith.constant 0 : i32
    %1 = arith.maxsi %0, %c0_i32 : i32
    %c0_i32_0 = arith.constant 0 : i32
    %c0_i32_1 = arith.constant 0 : i32
    return %arg0, %1, %c0_i32_0 : i32, i32, i32
  }
  func.func @transform_2(%arg0: i32, %arg1: i32) -> (i32, i32) {
    %c0_i32 = arith.constant 0 : i32
    %c0_i32_0 = arith.constant 0 : i32
    %c0_i32_1 = arith.constant 0 : i32
    return %c0_i32, %c0_i32_0 : i32, i32
  }
  func.func @transform_3(%arg0: i32, %arg1: i32) -> (i32, i32) {
    %c0_i32 = arith.constant 0 : i32
    %c0_i32_0 = arith.constant 0 : i32
    %c0_i32_1 = arith.constant 0 : i32
    return %c0_i32, %c0_i32_0 : i32, i32
  }
  func.func @transform_4(%arg0: i32, %arg1: i32) -> (i32, i32) {
    %c0_i32 = arith.constant 0 : i32
    %c0_i32_0 = arith.constant 0 : i32
    %c0_i32_1 = arith.constant 0 : i32
    return %c0_i32, %c0_i32_0 : i32, i32
  }
  func.func @transform_5(%arg0: i32, %arg1: i32) -> (i32, i32) {
    %c0_i32 = arith.constant 0 : i32
    %c0_i32_0 = arith.constant 0 : i32
    %c0_i32_1 = arith.constant 0 : i32
    return %c0_i32, %c0_i32_0 : i32, i32
  }
  func.func @transform_6(%arg0: i32, %arg1: i32) -> (i32, i32, i32) {
    %c0_i32 = arith.constant 0 : i32
    %c0_i32_0 = arith.constant 0 : i32
    return %arg0, %arg1, %c0_i32 : i32, i32, i32
  }
}

</mosaic_0001>

<bundles_post_ra>
// kernel: tile.38
= control target key start
LH: loop header
LB: loop body
LE: loop exit
PB: predicated region body
PF: predicated region fallthrough
CT: control target
= control target key end

     0   :  { %s28_s0 = inlined_call_operand.vmem [shape: f32[8], index: 0, kind: input, shape index: {}]   ;;  %s29_s1 = inlined_call_operand.vmem [shape: f32[16,8], index: 1, kind: output, shape index: {}]  }
   0x1   :  { %v4_v0 = vld [vmem:[%s28_s0] ss:$0 sm:$0xff] }
   0x2   :  { %5 = vst [vmem:[%s29_s1] sm:$0xff] %v4_v0 }
   0x3   :  { %8 = vst [vmem:[%s29_s1 + $0x8] sm:$0xff] %v4_v0 }

// kernel: tile.39
= control target key start
LH: loop header
LB: loop body
LE: loop exit
PB: predicated region body
PF: predicated region fallthrough
CT: control target
= control target key end

     0   :  { %s131_s10 = smov 120   ;;  %s132_s11 = smov 104   ;;  %vm3_vm0 = vcmask 64512   ;;  %vm9_vm1 = vcmask 1048512   ;;  %vm15_vm2 = vcmask 982912   ;;  %vm21_vm3 = vcmask 917312   ;;  %s207_s0 = inlined_call_operand.vmem [shape: f32[16,8], index: 0, kind: input, shape index: {}]   ;;  %s208_s1 = inlined_call_operand.vmem [shape: f32[1,128], index: 1, kind: output, shape index: {}]  }
   0x1   :  { %v101_v0 = vld [vmem:[%s207_s0 + $0xf] sm:$0x1]   ;;  %v103_v1 = vld [vmem:[%s207_s0 + $0xd] sm:$0x1]   ;;  %v105_v2 = vld [vmem:[%s207_s0 + $0xb] sm:$0x1]  }
   0x2   :  { %7 = vrot.lane.b32.xlu0 %v101_v0, %s131_s10  ;;  %19 = vrot.lane.b32.xlu1 %v103_v1, %s132_s11  ;;  %s133_s14 = smov 88   ;;  %v102_v3 = vld [vmem:[%s207_s0 + $0xe] sm:$0x1]   ;;  %v104_v4 = vld [vmem:[%s207_s0 + $0xc] sm:$0x1]   ;;  %s134_s19 = smov 112  }
   0x3   :  { %31 = vrot.lane.b32.xlu2 %v105_v2, %s133_s14  ;;  %s135_s20 = smov 96   ;;  %v106_v5 = vld [vmem:[%s207_s0 + $0xa] sm:$0x1]   ;;  %s136_s23 = smov 80   ;;  %v107_v6 = vld [vmem:[%s207_s0 + $0x9] sm:$0x1]  }
   0x4   :  { %v108_v7 = vld [vmem:[%s207_s0 + $0x8] sm:$0x1]   ;;  %s137_s28 = smov 72   ;;  %s138_s29 = smov 64   ;;  %v109_v8 = vld [vmem:[%s207_s0 + $0x7] sm:$0x1]  }
   0x5   :  { %s139_s3 = smov 56   ;;  %v110_v9 = vld [vmem:[%s207_s0 + $0x6] sm:$0x1]   ;;  %v111_v10 = vld [vmem:[%s207_s0 + $0x5] sm:$0x1]   ;;  %s140_s8 = smov 48  }
   0x6   :  { %s141_s9 = smov 40   ;;  %v112_v11 = vld [vmem:[%s207_s0 + $0x4] sm:$0x1]   ;;  %s142_s12 = smov 32   ;;  %v113_v12 = vld [vmem:[%s207_s0 + $0x3] sm:$0x1]  }
   0x7   :  { %v114_v13 = vld [vmem:[%s207_s0 + $0x2] sm:$0x1]   ;;  %s143_s17 = smov 24   ;;  %s144_s18 = smov 16   ;;  %v115_v14 = vld [vmem:[%s207_s0 + $0x1] sm:$0x1]  }
   0x8   :  { %s145_s21 = smov 8   ;;  %v2_v15 = vld [vmem:[%s207_s0] sm:$0x1]   ;;  %vm27_vm4 = vcmask 851712   ;;  %vm33_vm5 = vcmask 786112   ;;  %vm39_vm6 = vcmask 720512  }
   0x9   :  { %4 = vst.msk [vmem:[#allocation0] sm:$0x1] %vm3_vm0, %v2_v15   ;;  %vm45_vm7 = vcmask 654912   ;;  %vm51_vm8 = vcmask 589312   ;;  %vm57_vm9 = vcmask 523712   ;;  %vm63_vm10 = vcmask 458112  }
   0xa   :  { %13 = vrot.lane.b32.xlu0 %v102_v3, %s134_s19  ;;  %25 = vrot.lane.b32.xlu1 %v104_v4, %s135_s20  ;;  %vm69_vm11 = vcmask 392512   ;;  %vm75_vm12 = vcmask 326912   ;;  %vm81_vm13 = vcmask 261312   ;;  %vm87_vm14 = vcmask 195712  }
   0xb   :  { %37 = vrot.lane.b32.xlu2 %v106_v5, %s136_s23  ;;  %vm93_vm15 = vcmask 130112  }
  0x12   :  { %43 = vrot.lane.b32.xlu0 %v107_v6, %s137_s28  ;;  %49 = vrot.lane.b32.xlu1 %v108_v7, %s138_s29 }
  0x13   :  { %55 = vrot.lane.b32.xlu2 %v109_v8, %s139_s3 }
  0x1a   :  { %61 = vrot.lane.b32.xlu0 %v110_v9, %s140_s8  ;;  %67 = vrot.lane.b32.xlu1 %v111_v10, %s141_s9 }
  0x1b   :  { %73 = vrot.lane.b32.xlu2 %v112_v11, %s142_s12 }
  0x22   :  { %79 = vrot.lane.b32.xlu0 %v113_v12, %s143_s17  ;;  %85 = vrot.lane.b32.xlu1 %v114_v13, %s144_s18 }
  0x23   :  { %91 = vrot.lane.b32.xlu2 %v115_v14, %s145_s21 }
  0x5d   :  { %v32_v16 = vpop.permute.xlu2 %31  }
  0x65   :  { %v38_v17 = vpop.permute.xlu2 %37  }
  0x6d   :  { %v56_v18 = vpop.permute.xlu2 %55  }
  0x74   :  { %v8_v19 = vpop.permute.xlu0 %7   ;;  %v20_v20 = vpop.permute.xlu1 %19  }
  0x75   :  { %10 = vst.msk [vmem:[#allocation0] sm:$0x1] %vm9_vm1, %v8_v19   ;;  %v74_v21 = vpop.permute.xlu2 %73  }
  0x7c   :  { %v14_v22 = vpop.permute.xlu0 %13   ;;  %v26_v23 = vpop.permute.xlu1 %25  }
  0x7d   :  { %16 = vst.msk [vmem:[#allocation0] sm:$0x1] %vm15_vm2, %v14_v22   ;;  %v92_v24 = vpop.permute.xlu2 %91  }
  0x7e   :  { %22 = vst.msk [vmem:[#allocation0] sm:$0x1] %vm21_vm3, %v20_v20  }
  0x7f   :  { %28 = vst.msk [vmem:[#allocation0] sm:$0x1] %vm27_vm4, %v26_v23  }
  0x80   :  { %34 = vst.msk [vmem:[#allocation0] sm:$0x1] %vm33_vm5, %v32_v16  }
  0x81   :  { %40 = vst.msk [vmem:[#allocation0] sm:$0x1] %vm39_vm6, %v38_v17  }
  0x84   :  { %v44_v25 = vpop.permute.xlu0 %43   ;;  %v50_v26 = vpop.permute.xlu1 %49  }
  0x85   :  { %46 = vst.msk [vmem:[#allocation0] sm:$0x1] %vm45_vm7, %v44_v25  }
  0x86   :  { %52 = vst.msk [vmem:[#allocation0] sm:$0x1] %vm51_vm8, %v50_v26  }
  0x87   :  { %58 = vst.msk [vmem:[#allocation0] sm:$0x1] %vm57_vm9, %v56_v18  }
  0x8c   :  { %v62_v27 = vpop.permute.xlu0 %61   ;;  %v68_v28 = vpop.permute.xlu1 %67  }
  0x8d   :  { %64 = vst.msk [vmem:[#allocation0] sm:$0x1] %vm63_vm10, %v62_v27  }
  0x8e   :  { %70 = vst.msk [vmem:[#allocation0] sm:$0x1] %vm69_vm11, %v68_v28  }
  0x8f   :  { %76 = vst.msk [vmem:[#allocation0] sm:$0x1] %vm75_vm12, %v74_v21  }
  0x94   :  { %v80_v29 = vpop.permute.xlu0 %79   ;;  %v86_v30 = vpop.permute.xlu1 %85  }
  0x95   :  { %82 = vst.msk [vmem:[#allocation0] sm:$0x1] %vm81_vm13, %v80_v29  }
  0x96   :  { %88 = vst.msk [vmem:[#allocation0] sm:$0x1] %vm87_vm14, %v86_v30  }
  0x97   :  { %94 = vst.msk [vmem:[#allocation0] sm:$0x1] %vm93_vm15, %v92_v24  }
  0x9e   :  { %v97_v31 = vld [vmem:[#allocation0] sm:$0x1] }
  0x9f   :  { %100 = vst [vmem:[%s208_s1] sm:$0x1] %v97_v31 }

// kernel: tile.28
= control target key start
LH: loop header
LB: loop body
LE: loop exit
PB: predicated region body
PF: predicated region fallthrough
CT: control target
= control target key end

     0   :  { %s40_s0 = inlined_call_operand.vmem [shape: f32[4], index: 0, kind: input, shape index: {}]   ;;  %s41_s1 = inlined_call_operand.vmem [shape: f32[32,4], index: 1, kind: output, shape index: {}]  }
   0x1   :  { %v4_v0 = vld [vmem:[%s40_s0] ss:$0 sm:$0xff] }
   0x2   :  { %5 = vst [vmem:[%s41_s1] sm:$0xff] %v4_v0 }
   0x3   :  { %12 = vst [vmem:[%s41_s1 + $0x8] sm:$0xff] %v4_v0 }
   0x4   :  { %13 = vst [vmem:[%s41_s1 + $0x10] sm:$0xff] %v4_v0 }
   0x5   :  { %14 = vst [vmem:[%s41_s1 + $0x18] sm:$0xff] %v4_v0 }

// kernel: tile.29
= control target key start
LH: loop header
LB: loop body
LE: loop exit
PB: predicated region body
PF: predicated region fallthrough
CT: control target
= control target key end

     0   :  { %s259_s10 = smov 124   ;;  %s260_s11 = smov 116   ;;  %vm3_vm0 = vcmask 31744   ;;  %vm9_vm1 = vcmask 1048544   ;;  %vm15_vm2 = vcmask 1015744   ;;  %vm21_vm3 = vcmask 982944   ;;  %s399_s0 = inlined_call_operand.vmem [shape: f32[32,4], index: 0, kind: input, shape index: {}]   ;;  %s400_s1 = inlined_call_operand.vmem [shape: f32[1,128], index: 1, kind: output, shape index: {}]  }
   0x1   :  { %v197_v0 = vld [vmem:[%s399_s0 + $0x1f] sm:$0x1]   ;;  %v199_v1 = vld [vmem:[%s399_s0 + $0x1d] sm:$0x1]   ;;  %v201_v2 = vld [vmem:[%s399_s0 + $0x1b] sm:$0x1]  }
   0x2   :  { %7 = vrot.lane.b32.xlu0 %v197_v0, %s259_s10  ;;  %19 = vrot.lane.b32.xlu1 %v199_v1, %s260_s11  ;;  %s261_s14 = smov 108   ;;  %v198_v3 = vld [vmem:[%s399_s0 + $0x1e] sm:$0x1]   ;;  %v200_v4 = vld [vmem:[%s399_s0 + $0x1c] sm:$0x1]   ;;  %s262_s19 = smov 120  }
   0x3   :  { %31 = vrot.lane.b32.xlu2 %v201_v2, %s261_s14  ;;  %s263_s20 = smov 112   ;;  %v202_v5 = vld [vmem:[%s399_s0 + $0x1a] sm:$0x1]   ;;  %s264_s23 = smov 104   ;;  %v203_v6 = vld [vmem:[%s399_s0 + $0x19] sm:$0x1]  }
   0x4   :  { %v204_v7 = vld [vmem:[%s399_s0 + $0x18] sm:$0x1]   ;;  %s265_s28 = smov 100   ;;  %s266_s29 = smov 96   ;;  %v205_v8 = vld [vmem:[%s399_s0 + $0x17] sm:$0x1]  }
   0x5   :  { %s267_s3 = smov 92   ;;  %v206_v9 = vld [vmem:[%s399_s0 + $0x16] sm:$0x1]   ;;  %v207_v10 = vld [vmem:[%s399_s0 + $0x15] sm:$0x1]   ;;  %s268_s8 = smov 88  }
   0x6   :  { %s269_s9 = smov 84   ;;  %v208_v11 = vld [vmem:[%s399_s0 + $0x14] sm:$0x1]   ;;  %s270_s12 = smov 80   ;;  %v209_v12 = vld [vmem:[%s399_s0 + $0x13] sm:$0x1]  }
   0x7   :  { %v210_v13 = vld [vmem:[%s399_s0 + $0x12] sm:$0x1]   ;;  %s271_s17 = smov 76   ;;  %s272_s18 = smov 72   ;;  %v211_v14 = vld [vmem:[%s399_s0 + $0x11] sm:$0x1]  }
   0x8   :  { %s273_s21 = smov 68   ;;  %v212_v15 = vld [vmem:[%s399_s0 + $0x10] sm:$0x1]   ;;  %v213_v16 = vld [vmem:[%s399_s0 + $0xf] sm:$0x1]   ;;  %s274_s26 = smov 64  }
   0x9   :  { %s275_s27 = smov 60   ;;  %v214_v17 = vld [vmem:[%s399_s0 + $0xe] sm:$0x1]   ;;  %s276_s30 = smov 56   ;;  %v215_v18 = vld [vmem:[%s399_s0 + $0xd] sm:$0x1]  }
   0xa   :  { %13 = vrot.lane.b32.xlu0 %v198_v3, %s262_s19  ;;  %25 = vrot.lane.b32.xlu1 %v200_v4, %s263_s20  ;;  %v216_v19 = vld [vmem:[%s399_s0 + $0xc] sm:$0x1]   ;;  %s277_s6 = smov 52   ;;  %s278_s7 = smov 48   ;;  %v217_v20 = vld [vmem:[%s399_s0 + $0xb] sm:$0x1]  }
   0xb   :  { %37 = vrot.lane.b32.xlu2 %v202_v5, %s264_s23  ;;  %s279_s10 = smov 44   ;;  %v218_v21 = vld [vmem:[%s399_s0 + $0xa] sm:$0x1]   ;;  %v219_v22 = vld [vmem:[%s399_s0 + $0x9] sm:$0x1]   ;;  %s280_s15 = smov 40  }
   0xc   :  { %s281_s16 = smov 36   ;;  %v220_v23 = vld [vmem:[%s399_s0 + $0x8] sm:$0x1]   ;;  %s282_s19 = smov 32   ;;  %v221_v24 = vld [vmem:[%s399_s0 + $0x7] sm:$0x1]  }
   0xd   :  { %v222_v25 = vld [vmem:[%s399_s0 + $0x6] sm:$0x1]   ;;  %s283_s24 = smov 28   ;;  %s284_s25 = smov 24   ;;  %v223_v26 = vld [vmem:[%s399_s0 + $0x5] sm:$0x1]  }
   0xe   :  { %v224_v27 = vld [vmem:[%s399_s0 + $0x4] sm:$0x1]   ;;  %v225_v28 = vld [vmem:[%s399_s0 + $0x3] sm:$0x1]   ;;  %s286_s4 = smov 16   ;;  %s287_s5 = smov 12  }
   0xf   :  { %v226_v29 = vld [vmem:[%s399_s0 + $0x2] sm:$0x1]   ;;  %v227_v30 = vld [vmem:[%s399_s0 + $0x1] sm:$0x1]   ;;  %s289_s11 = smov 4   ;;  %vm27_vm4 = vcmask 950144  }
  0x10   :  { %v2_v31 = vld [vmem:[%s399_s0] sm:$0x1]   ;;  %vm33_vm5 = vcmask 917344   ;;  %vm39_vm6 = vcmask 884544   ;;  %vm45_vm7 = vcmask 851744   ;;  %vm51_vm8 = vcmask 818944  }
  0x11   :  { %4 = vst.msk [vmem:[#allocation0] sm:$0x1] %vm3_vm0, %v2_v31   ;;  %vm57_vm9 = vcmask 786144   ;;  %vm63_vm10 = vcmask 753344   ;;  %vm69_vm11 = vcmask 720544   ;;  %vm75_vm12 = vcmask 687744  }
  0x12   :  { %43 = vrot.lane.b32.xlu0 %v203_v6, %s265_s28  ;;  %49 = vrot.lane.b32.xlu1 %v204_v7, %s266_s29  ;;  %s285_s28 = smov 20   ;;  %vm81_vm13 = vcmask 654944   ;;  %vm87_vm14 = vcmask 622144   ;;  %vm93_vm15 = vcmask 589344   ;;  %vm99_vm0 = vcmask 556544  }
  0x13   :  { %55 = vrot.lane.b32.xlu2 %v205_v8, %s267_s3 }
  0x1a   :  { %61 = vrot.lane.b32.xlu0 %v206_v9, %s268_s8  ;;  %67 = vrot.lane.b32.xlu1 %v207_v10, %s269_s9  ;;  %s288_s8 = smov 8  }
  0x1b   :  { %73 = vrot.lane.b32.xlu2 %v208_v11, %s270_s12 }
  0x22   :  { %79 = vrot.lane.b32.xlu0 %v209_v12, %s271_s17  ;;  %85 = vrot.lane.b32.xlu1 %v210_v13, %s272_s18 }
  0x23   :  { %91 = vrot.lane.b32.xlu2 %v211_v14, %s273_s21 }
  0x2a   :  { %97 = vrot.lane.b32.xlu0 %v212_v15, %s274_s26  ;;  %103 = vrot.lane.b32.xlu1 %v213_v16, %s275_s27 }
  0x2b   :  { %109 = vrot.lane.b32.xlu2 %v214_v17, %s276_s30 }
  0x32   :  { %115 = vrot.lane.b32.xlu0 %v215_v18, %s277_s6  ;;  %121 = vrot.lane.b32.xlu1 %v216_v19, %s278_s7 }
  0x33   :  { %127 = vrot.lane.b32.xlu2 %v217_v20, %s279_s10 }
  0x3a   :  { %133 = vrot.lane.b32.xlu0 %v218_v21, %s280_s15  ;;  %139 = vrot.lane.b32.xlu1 %v219_v22, %s281_s16 }
  0x3b   :  { %145 = vrot.lane.b32.xlu2 %v220_v23, %s282_s19 }
  0x42   :  { %151 = vrot.lane.b32.xlu0 %v221_v24, %s283_s24  ;;  %157 = vrot.lane.b32.xlu1 %v222_v25, %s284_s25 }
  0x43   :  { %163 = vrot.lane.b32.xlu2 %v223_v26, %s285_s28 }
  0x4a   :  { %169 = vrot.lane.b32.xlu0 %v224_v27, %s286_s4  ;;  %175 = vrot.lane.b32.xlu1 %v225_v28, %s287_s5 }
  0x4b   :  { %181 = vrot.lane.b32.xlu2 %v226_v29, %s288_s8 }
  0x52   :  { %187 = vrot.lane.b32.xlu0 %v227_v30, %s289_s11 }
  0x5d   :  { %v32_v32 = vpop.permute.xlu2 %31  }
  0x65   :  { %v38_v33 = vpop.permute.xlu2 %37  }
  0x6d   :  { %v56_v34 = vpop.permute.xlu2 %55  }
  0x74   :  { %v8_v35 = vpop.permute.xlu0 %7   ;;  %v20_v36 = vpop.permute.xlu1 %19  }
  0x75   :  { %10 = vst.msk [vmem:[#allocation0] sm:$0x1] %vm9_vm1, %v8_v35   ;;  %v74_v37 = vpop.permute.xlu2 %73   ;;  %vm105_vm1 = vcmask 523744  }
  0x7c   :  { %v14_v38 = vpop.permute.xlu0 %13   ;;  %v26_v39 = vpop.permute.xlu1 %25  }
  0x7d   :  { %16 = vst.msk [vmem:[#allocation0] sm:$0x1] %vm15_vm2, %v14_v38   ;;  %v92_v40 = vpop.permute.xlu2 %91   ;;  %vm111_vm2 = vcmask 490944  }
  0x7e   :  { %22 = vst.msk [vmem:[#allocation0] sm:$0x1] %vm21_vm3, %v20_v36   ;;  %vm117_vm3 = vcmask 458144  }
  0x7f   :  { %28 = vst.msk [vmem:[#allocation0] sm:$0x1] %vm27_vm4, %v26_v39   ;;  %vm123_vm4 = vcmask 425344  }
  0x80   :  { %34 = vst.msk [vmem:[#allocation0] sm:$0x1] %vm33_vm5, %v32_v32   ;;  %vm129_vm5 = vcmask 392544  }
  0x81   :  { %40 = vst.msk [vmem:[#allocation0] sm:$0x1] %vm39_vm6, %v38_v33   ;;  %vm135_vm6 = vcmask 359744  }
  0x84   :  { %v44_v41 = vpop.permute.xlu0 %43   ;;  %v50_v42 = vpop.permute.xlu1 %49  }
  0x85   :  { %46 = vst.msk [vmem:[#allocation0] sm:$0x1] %vm45_vm7, %v44_v41   ;;  %v110_v43 = vpop.permute.xlu2 %109   ;;  %vm141_vm7 = vcmask 326944  }
  0x86   :  { %52 = vst.msk [vmem:[#allocation0] sm:$0x1] %vm51_vm8, %v50_v42   ;;  %vm147_vm8 = vcmask 294144  }
  0x87   :  { %58 = vst.msk [vmem:[#allocation0] sm:$0x1] %vm57_vm9, %v56_v34   ;;  %vm153_vm9 = vcmask 261344  }
  0x8c   :  { %v62_v44 = vpop.permute.xlu0 %61   ;;  %v68_v45 = vpop.permute.xlu1 %67  }
  0x8d   :  { %64 = vst.msk [vmem:[#allocation0] sm:$0x1] %vm63_vm10, %v62_v44   ;;  %v128_v46 = vpop.permute.xlu2 %127   ;;  %vm159_vm10 = vcmask 228544  }
  0x8e   :  { %70 = vst.msk [vmem:[#allocation0] sm:$0x1] %vm69_vm11, %v68_v45   ;;  %vm165_vm11 = vcmask 195744  }
  0x8f   :  { %76 = vst.msk [vmem:[#allocation0] sm:$0x1] %vm75_vm12, %v74_v37   ;;  %vm171_vm12 = vcmask 162944  }
  0x94   :  { %v80_v47 = vpop.permute.xlu0 %79   ;;  %v86_v48 = vpop.permute.xlu1 %85  }
  0x95   :  { %82 = vst.msk [vmem:[#allocation0] sm:$0x1] %vm81_vm13, %v80_v47   ;;  %v146_v49 = vpop.permute.xlu2 %145   ;;  %vm177_vm13 = vcmask 130144  }
  0x96   :  { %88 = vst.msk [vmem:[#allocation0] sm:$0x1] %vm87_vm14, %v86_v48   ;;  %vm183_vm14 = vcmask 97344  }
  0x97   :  { %94 = vst.msk [vmem:[#allocation0] sm:$0x1] %vm93_vm15, %v92_v40   ;;  %vm189_vm15 = vcmask 64544  }
  0x9c   :  { %v98_v50 = vpop.permute.xlu0 %97   ;;  %v104_v51 = vpop.permute.xlu1 %103  }
  0x9d   :  { %100 = vst.msk [vmem:[#allocation0] sm:$0x1] %vm99_vm0, %v98_v50   ;;  %v164_v52 = vpop.permute.xlu2 %163  }
  0x9e   :  { %106 = vst.msk [vmem:[#allocation0] sm:$0x1] %vm105_vm1, %v104_v51  }
  0x9f   :  { %112 = vst.msk [vmem:[#allocation0] sm:$0x1] %vm111_vm2, %v110_v43  }
  0xa4   :  { %v116_v53 = vpop.permute.xlu0 %115   ;;  %v122_v54 = vpop.permute.xlu1 %121  }
  0xa5   :  { %118 = vst.msk [vmem:[#allocation0] sm:$0x1] %vm117_vm3, %v116_v53   ;;  %v182_v55 = vpop.permute.xlu2 %181  }
  0xa6   :  { %124 = vst.msk [vmem:[#allocation0] sm:$0x1] %vm123_vm4, %v122_v54  }
  0xa7   :  { %130 = vst.msk [vmem:[#allocation0] sm:$0x1] %vm129_vm5, %v128_v46  }
  0xac   :  { %v134_v56 = vpop.permute.xlu0 %133   ;;  %v140_v57 = vpop.permute.xlu1 %139  }
  0xad   :  { %136 = vst.msk [vmem:[#allocation0] sm:$0x1] %vm135_vm6, %v134_v56  }
  0xae   :  { %142 = vst.msk [vmem:[#allocation0] sm:$0x1] %vm141_vm7, %v140_v57  }
  0xaf   :  { %148 = vst.msk [vmem:[#allocation0] sm:$0x1] %vm147_vm8, %v146_v49  }
  0xb4   :  { %v152_v58 = vpop.permute.xlu0 %151   ;;  %v158_v59 = vpop.permute.xlu1 %157  }
  0xb5   :  { %154 = vst.msk [vmem:[#allocation0] sm:$0x1] %vm153_vm9, %v152_v58  }
  0xb6   :  { %160 = vst.msk [vmem:[#allocation0] sm:$0x1] %vm159_vm10, %v158_v59  }
  0xb7   :  { %166 = vst.msk [vmem:[#allocation0] sm:$0x1] %vm165_vm11, %v164_v52  }
  0xbc   :  { %v170_v60 = vpop.permute.xlu0 %169   ;;  %v176_v61 = vpop.permute.xlu1 %175  }
  0xbd   :  { %172 = vst.msk [vmem:[#allocation0] sm:$0x1] %vm171_vm12, %v170_v60  }
  0xbe   :  { %178 = vst.msk [vmem:[#allocation0] sm:$0x1] %vm177_vm13, %v176_v61  }
  0xbf   :  { %184 = vst.msk [vmem:[#allocation0] sm:$0x1] %vm183_vm14, %v182_v55  }
  0xc4   :  { %v188_v62 = vpop.permute.xlu0 %187  }
  0xc5   :  { %190 = vst.msk [vmem:[#allocation0] sm:$0x1] %vm189_vm15, %v188_v62  }
  0xcc   :  { %v193_v63 = vld [vmem:[#allocation0] sm:$0x1] }
  0xcd   :  { %196 = vst [vmem:[%s400_s1] sm:$0x1] %v193_v63 }

// kernel: weight_cat_forward.1
= control target key start
LH: loop header
LB: loop body
LE: loop exit
PB: predicated region body
PF: predicated region fallthrough
CT: control target
= control target key end

     0   :  { %s625_s21 = smov 0   ;;  %s627_s22 = smov 0   ;;  %s700_s0 = inlined_call_operand.vmem [shape: f32[2,8,128], index: 0, kind: input, shape index: {}]   ;;  %s701_s1 = inlined_call_operand.vmem [shape: f32[2,16,128], index: 1, kind: input, shape index: {}]   ;;  %s702_s2 = inlined_call_operand.vmem [shape: f32[1,128], index: 2, kind: input, shape index: {}]   ;;  %s703_s3 = inlined_call_operand.vmem [shape: f32[1,128], index: 3, kind: input, shape index: {}]   ;;  %s704_s4 = inlined_call_operand.vmem [shape: f32[1,128], index: 4, kind: input, shape index: {}]   ;;  %s705_s5 = inlined_call_operand.vmem [shape: f32[1,128], index: 5, kind: input, shape index: {}]   ;;  %s706_s6 = inlined_call_operand.vmem [shape: f32[2,24,128], index: 6, kind: output, shape index: {}]  }
   0x1   :  { %s629_s23 = smov 0   ;;  %s631_s24 = smov 0  }
   0x2   :  { %s633_s25 = smov 0  }
   0x3 LB: > { %s25_s26 = sadd.s32 1, %s580_s23  ;;  %s28_s27 = sadd.s32 1, %s584_s24  ;;  %s588_s25 = sphi %s633_s25, %s16_s25   ;;  %s584_s24 = sphi %s631_s24, %s712_s24   ;;  %s580_s23 = sphi %s629_s23, %s711_s23   ;;  %s576_s22 = sphi %s627_s22, %s710_s22   ;;  %s572_s21 = sphi %s625_s21, %s709_s21  }
   0x4   : > { %p26_p0 = scmp.ge.s32.totalorder %s25_s26, 3  ;;  %p485_p1 = scmp.ge.s32.totalorder %s588_s25, 1 }
   0x5   : > { %p265_p2 = scmp.lt.s32.totalorder %s588_s25, 7 }
   0x6   : > { %s714_s26 = smov (%p26_p0, %s25_s26), 0  ;;  %s716_s27 = smov (!%p26_p0, %s28_s27), %s584_s24 }
   0x7   : > { %p266_p3 = pnand %p485_p1, %p265_p2  ;;  %p30_p4 = scmp.ge.s32.totalorder %s716_s27, 2 }
   0x8   : > { %p313_p5 = scmp.lt.s32.totalorder (!%p266_p3), %s572_s21, 0  ;;  %p315_p6 = scmp.lt.s32.totalorder (!%p266_p3), %s576_s22, 1 }
   0x9   : > { %s718_s27 = smov (%p30_p4, %s716_s27), 0  ;;  %269 = sbr.rel (%p266_p3) target bundleno = 47 (0x2f), region = 44 }
   0xa   : > { %707 = sst [smem:[#allocation2_spill]] %s718_s27  ;;  %s490_s28 = sadd.s32 (!%p266_p3), 4294967295, %s572_s21 }
   0xb   : > { %p325_p7 = scmp.gt.s32.totalorder (!%p266_p3), %s490_s28, 0  ;;  %p340_p8 = scmp.lt.s32.totalorder (!%p266_p3), %s572_s21, 2 }
   0xc   : > { %p491_p9 = scmp.lt.s32.totalorder (!%p266_p3), %s490_s28, 1  ;;  %p499_p10 = scmp.ge.s32.totalorder (!%p266_p3), %s572_s21, 1 }
   0xe   : > { %s314_s29 = scalar_select %p313_p5, %s572_s21, 0 }
   0xf   : > { %s720_s22 = smov (!%p315_p6, %s576_s22), 1  ;;  %s724_s28 = smov (!%p325_p7, %s490_s28), 0 }
  0x10   : > { %s722_s29 = smov (!%p313_p5, %s314_s29), 0  ;;  %s496_s8 = sshll.u32 %s720_s22, 1 }
  0x11   : > { %s319_s30 = sadd.s32 %s722_s29, %s720_s22  ;;  %s505_s12 = smul.u32 3, %s720_s22 }
  0x12   : > { %s489_s7 = sshll.u32 %s319_s30, 3  ;;  %s726_s28 = smov (!%p491_p9, %s724_s28), 1 }
  0x13   : > { %s321_s11 = scalar_lea.vmem %s700_s0, %s489_s7  ;;  %s332_s15 = sadd.s32 %s726_s28, %s496_s8 }
  0x14   : > { %s341_s13 = scalar_select %p340_p8, %s572_s21, 2 }
  0x15   : > { %s497_s17 = sshll.u32 %s332_s15, 3  ;;  %349 = sbr.rel (%p499_p10) target bundleno = 33 (0x21), region = 48 }
  0x16   : > { %s343_s14 = sadd.s32 %s505_s12, %s341_s13  ;;  %s334_s30 = scalar_lea.vmem %s701_s1, %s497_s17 }
  0x17   : > { %s498_s16 = sshll.u32 %s343_s14, 3 }
  0x18   : > { %s345_s20 = scalar_lea.vmem %s706_s6, %s498_s16 }
  0x1a   : > { %v350_v0 = vld [vmem:[%s321_s11] sm:$0xff] }
  0x1b   : > { %v546_v1 = vld [vmem:[%s702_s2] ss:$0 sm:$0xff] }
  0x1c   : > { %v547_v2 = vld [vmem:[%s703_s3] ss:$0 sm:$0xff]  ;;  %v355_v3 = vmul.f32 %v546_v1, %v350_v0 }
  0x1e   : > { %v360_v4 = vadd.f32 %v547_v2, %v355_v3 }
  0x20   : > { %361 = vst [vmem:[%s345_s20] sm:$0xff] %v360_v4 }
  0x21 PF: > { %p500_p11 = scmp.lt.s32.totalorder %s572_s21, 1 }
  0x23   : > { %365 = sbr.rel (%p500_p11) target bundleno = 47 (0x2f), region = 52 }
  0x28   : > { %v366_v5 = vld [vmem:[%s334_s30] sm:$0xff] }
  0x29   : > { %v548_v6 = vld [vmem:[%s704_s4] ss:$0 sm:$0xff] }
  0x2a   : > { %v549_v7 = vld [vmem:[%s705_s5] ss:$0 sm:$0xff]  ;;  %v371_v8 = vmul.f32 %v548_v6, %v366_v5 }
  0x2c   : > { %v376_v9 = vadd.f32 %v549_v7, %v371_v8 }
  0x2e   : > { %377 = vst [vmem:[%s345_s20] sm:$0xff] %v376_v9 }
  0x2f PF: > { %s16_s25 = sadd.s32 1, %s588_s25   ;;  %s708_s12 = sld [smem:[#allocation2_spill]] }
  0x30   : > { %p13_p12 = scmp.ge.s32.totalorder %s16_s25, 8   ;;  %s709_s21 = smov %s580_s23 }
  0x31   : > { %s710_s22 = smov %s584_s24  ;;  %s711_s23 = smov %s714_s26 }
  0x32   :  { %15 = sbr.rel (!%p13_p12) target bundleno = 3 (0x3), region = 85 }
  0x35   : > { %s712_s24 = smov %s708_s12 }

</bundles_post_ra>
